<compile_context>
chip_gen: v7x
topology: tpu7x:2x2x1
jax: 0.10.0
libtpu: 0.0.40
codegen_flags: <defaults>
</compile_context>

<pallas_src>
import numpy as np
import jax
import jax.numpy as jnp
from jax.experimental import pallas as pl
from jax.experimental.pallas import tpu as pltpu


def _pixel_shift_kernel(shift_ref, x_ref, o_ref):
    # shift_ref: (2*D,) int32 in SMEM (scalar prefetch); entry 2*i / 2*i+1 are the
    #            nonnegative (already mod H / mod W) row/col shifts of depth layer i.
    # x_ref / o_ref: (cg, dg, H, W) VMEM tile.  Grid = (channel group, depth group),
    #                depth group innermost.
    i = pl.program_id(1)          # depth-group index (innermost grid axis)
    dg = x_ref.shape[1]
    base = i * dg
    for d in range(dg):           # static unrolled loop over fused depth layers
        layer = base + d
        s_h = shift_ref[2 * layer]
        s_w = shift_ref[2 * layer + 1]
        y = x_ref[:, d, :, :]                 # (cg, H, W)
        # pltpu.roll matches np.roll / torch.roll; positive axes required.
        y = pltpu.roll(y, s_h, axis=1)        # rows (H, sublane axis)
        y = pltpu.roll(y, s_w, axis=2)        # cols (W, lane axis)
        o_ref[:, d, :, :] = y


def _default_block_budget():
    """~VMEM/16: 4 MiB blocks on v7x (64 MiB VMEM), 8 MiB on v5e/v6e (128 MiB)."""
    vmem_bytes = None
    try:
        info = pltpu.get_tpu_info()
        vmem_bytes = getattr(info, "vmem_capacity_bytes", None)
    except Exception:
        vmem_bytes = None
    if not vmem_bytes:
        vmem_bytes = 64 * 1024 * 1024  # conservative (v7x-sized)
    return max(1 << 20, int(vmem_bytes) // 16)


def pixel_shift_pallas(x, shift_flat, *, max_block_bytes=None, donate=False):
    """x: (C, D, H, W); shift_flat: (2*D,) int32, nonnegative (dh, dw) per layer.

    For lane-dense (unmasked) stores, W should be a multiple of 128.
    """
    C, D, H, W = x.shape
    itemsize = jnp.dtype(x.dtype).itemsize
    if max_block_bytes is None:
        max_block_bytes = _default_block_budget()

    per_layer = C * H * W * itemsize          # one depth layer, all channels

    if per_layer <= max_block_bytes:
        # Depth-fusion path: all channels + a group of dg depth layers per block.
        cg = C
        min_steps = min(4, D)                 # keep pipelining / megacore split
        dg = 1
        for cand in range(1, D + 1):
            if (D % cand == 0 and cand * per_layer <= max_block_bytes
                    and D // cand >= min_steps and cand <= 64):
                dg = cand
    else:
        # Channel-tiling fallback (one depth layer per block, ragged last group OK).
        dg = 1
        per_ch = H * W * itemsize
        cg = int(max(1, min(C, max_block_bytes // per_ch)))
        # TODO(synk): add an H-tiling (wrap-aware) path for when even a single
        # (H, W) plane exceeds the block budget; currently the full plane is used.

    block_bytes = cg * dg * H * W * itemsize
    grid = (pl.cdiv(C, cg), D // dg)          # depth groups innermost (contiguous HBM)

    vmem_limit = int(min(4 * block_bytes + (8 << 20), 100 << 20))

    grid_spec = pltpu.PrefetchScalarGridSpec(
        num_scalar_prefetch=1,
        grid=grid,
        in_specs=[pl.BlockSpec((cg, dg, H, W), lambda c, i, s: (c, i, 0, 0))],
        out_specs=pl.BlockSpec((cg, dg, H, W), lambda c, i, s: (c, i, 0, 0)),
    )
    return pl.pallas_call(
        _pixel_shift_kernel,
        grid_spec=grid_spec,
        out_shape=jax.ShapeDtypeStruct((C, D, H, W), x.dtype),
        compiler_params=pltpu.CompilerParams(
            dimension_semantics=("parallel", "parallel"),
            vmem_limit_bytes=vmem_limit),
        cost_estimate=pl.CostEstimate(
            flops=0, transcendentals=0,
            bytes_accessed=2 * C * D * H * W * itemsize),
        input_output_aliases=({1: 0} if donate else {}),
    )(shift_flat, x)


def compute_shifts(key, shape, max_shift=(0.1, 0.1), ref=3, layerwise=False):
    """Reproduces the torch random-shift computation (always in float32)."""
    C, D, H, W = shape
    f32 = jnp.float32
    ms = jnp.asarray(max_shift, f32)
    hw = jnp.asarray([H, W], f32)
    if layerwise:
        u = jax.random.uniform(key, (D, 2), f32)
        ms = u * ms * 2 - ms
        shift = (ms * hw).astype(jnp.int32)   # truncation toward zero, like torch .long()
        shift = shift.at[ref].set(0)          # reference layer left untouched
    else:
        u = jax.random.uniform(key, (2,), f32)
        ms = (u * ms * 2 - ms) / (D - 1)
        sh = (jnp.arange(D, dtype=f32) - ref)[:, None] * ms[None, :]
        shift = (sh * hw).astype(jnp.int32)   # shift[ref] is exactly 0 here
    return shift


class PixelShift:
    """Pallas re-implementation of the PyTorch PixelShift module (fill='none' path)."""
    # TODO(synk): the fill='mean' / constant-fill branch (which statefully overwrites
    # `fill` with the first processed layer's mean) is not reproduced; only the
    # default fill='none' path is implemented.

    def __init__(self, max_shift=(0.1, 0.1), fill='none', ref=3, layerwise=False):
        assert fill == 'none', "only fill='none' is implemented"
        self.max_shift = max_shift
        self.ref = ref
        self.layerwise = layerwise

    def __call__(self, x, key, *, donate=False):
        C, D, H, W = x.shape
        shift = compute_shifts(key, x.shape, self.max_shift, self.ref, self.layerwise)
        # torch.roll wraps, so negative shifts are equivalent to (shift mod size).
        shift_nn = jnp.stack([shift[:, 0] % H, shift[:, 1] % W], axis=1).astype(jnp.int32)
        shift_flat = shift_nn.reshape(-1)     # 1-D (2*D,) -> minimal SMEM padding
        return pixel_shift_pallas(x, shift_flat, donate=donate), shift


if __name__ == "__main__":
    key = jax.random.PRNGKey(0)
    k_x, k_shift = jax.random.split(key)

    # PyTorch input convention: (C, D, H, W); W a multiple of 128 for lane-dense stores.
    C, D, H, W = 4, 8, 32, 128
    x = jax.random.normal(k_x, (C, D, H, W), jnp.float32)

    ref_layer = 3
    max_shift = (0.3, 0.15)  # large enough that both H and W shifts are exercised
    mod = PixelShift(max_shift=max_shift, fill='none', ref=ref_layer, layerwise=False)

    x_np = np.asarray(x)  # snapshot before the kernel runs
    out, shift = mod(x, k_shift)
    out = jax.block_until_ready(out)

    # Pure-numpy reference mirroring the torch loop with np.roll.
    shift_np = np.asarray(shift)
    ref = x_np.transpose(1, 0, 2, 3).copy()  # (D, C, H, W)
    for i in range(D):
        if i == ref_layer:
            continue
        ref[i] = np.roll(ref[i], (int(shift_np[i, 0]), int(shift_np[i, 1])), axis=(-2, -1))
    ref = ref.transpose(1, 0, 2, 3)  # back to (C, D, H, W)

    assert out.shape == x.shape and out.dtype == x.dtype
    np.testing.assert_allclose(np.asarray(out), ref, rtol=0, atol=0)
    print("KERNEL_OK")
</pallas_src>

<mosaic_0001>
module attributes {stable_mosaic.version = 11 : i64} {
  func.func @_pixel_shift_kernel(%arg0: i32, %arg1: i32, %arg2: memref<16xi32, #tpu.memory_space<smem>>, %arg3: memref<4x2x32x128xf32, #tpu.memory_space<vmem>>, %arg4: memref<4x2x32x128xf32, #tpu.memory_space<vmem>>) attributes {dimension_semantics = [#tpu.dimension_semantics<parallel>, #tpu.dimension_semantics<parallel>], iteration_bounds = array<i64: 1, 4>, scalar_prefetch = 1 : i64, scratch_operands = 0 : i64, tpu.core_type = #tpu.core_type<tc>, window_params = [{transform_indices = @transform_0, window_bounds = array<i64: 4, 2, 32, 128>}, {transform_indices = @transform_1, window_bounds = array<i64: 4, 2, 32, 128>}]} {
    %c2_i32 = arith.constant 2 : i32
    %0 = arith.muli %arg1, %c2_i32 : i32
    %c0_i32 = arith.constant 0 : i32
    %1 = arith.addi %0, %c0_i32 : i32
    %c2_i32_0 = arith.constant 2 : i32
    %2 = arith.muli %c2_i32_0, %1 : i32
    %3 = arith.index_cast %2 : i32 to index
    %4 = memref.load %arg2[%3] : memref<16xi32, #tpu.memory_space<smem>>
    %c2_i32_1 = arith.constant 2 : i32
    %5 = arith.muli %c2_i32_1, %1 : i32
    %c1_i32 = arith.constant 1 : i32
    %6 = arith.addi %5, %c1_i32 : i32
    %7 = arith.index_cast %6 : i32 to index
    %8 = memref.load %arg2[%7] : memref<16xi32, #tpu.memory_space<smem>>
    %c0 = arith.constant 0 : index
    %c0_2 = arith.constant 0 : index
    %c0_3 = arith.constant 0 : index
    %c0_4 = arith.constant 0 : index
    %9 = vector.load %arg3[%c0, %c0_2, %c0_3, %c0_4] : memref<4x2x32x128xf32, #tpu.memory_space<vmem>>, vector<4x1x32x128xf32>
    %10 = vector.shape_cast %9 : vector<4x1x32x128xf32> to vector<4x32x128xf32>
    %11 = tpu.dynamic_rotate %10 by %4 dim 1 : vector<4x32x128xf32>, i32 -> vector<4x32x128xf32>
    %12 = tpu.dynamic_rotate %11 by %8 dim 2 : vector<4x32x128xf32>, i32 -> vector<4x32x128xf32>
    %c0_5 = arith.constant 0 : index
    %c0_6 = arith.constant 0 : index
    %c0_7 = arith.constant 0 : index
    %c0_8 = arith.constant 0 : index
    %13 = vector.load %arg4[%c0_5, %c0_6, %c0_7, %c0_8] : memref<4x2x32x128xf32, #tpu.memory_space<vmem>>, vector<4x1x32x128xf32>
    %14 = vector.shape_cast %13 : vector<4x1x32x128xf32> to vector<4x32x128xf32>
    %15 = vector.shape_cast %12 : vector<4x32x128xf32> to vector<4x1x32x128xf32>
    tpu.vector_store %arg4[%c0_5, %c0_6, %c0_7, %c0_8], %15 {strides = array<i32>} : memref<4x2x32x128xf32, #tpu.memory_space<vmem>>, vector<4x1x32x128xf32>,
    %c1_i32_9 = arith.constant 1 : i32
    %16 = arith.addi %0, %c1_i32_9 : i32
    %c2_i32_10 = arith.constant 2 : i32
    %17 = arith.muli %c2_i32_10, %16 : i32
    %18 = arith.index_cast %17 : i32 to index
    %19 = memref.load %arg2[%18] : memref<16xi32, #tpu.memory_space<smem>>
    %c2_i32_11 = arith.constant 2 : i32
    %20 = arith.muli %c2_i32_11, %16 : i32
    %c1_i32_12 = arith.constant 1 : i32
    %21 = arith.addi %20, %c1_i32_12 : i32
    %22 = arith.index_cast %21 : i32 to index
    %23 = memref.load %arg2[%22] : memref<16xi32, #tpu.memory_space<smem>>
    %c0_13 = arith.constant 0 : index
    %c1 = arith.constant 1 : index
    %c0_14 = arith.constant 0 : index
    %c0_15 = arith.constant 0 : index
    %24 = vector.load %arg3[%c0_13, %c1, %c0_14, %c0_15] : memref<4x2x32x128xf32, #tpu.memory_space<vmem>>, vector<4x1x32x128xf32>
    %25 = vector.shape_cast %24 : vector<4x1x32x128xf32> to vector<4x32x128xf32>
    %26 = tpu.dynamic_rotate %25 by %19 dim 1 : vector<4x32x128xf32>, i32 -> vector<4x32x128xf32>
    %27 = tpu.dynamic_rotate %26 by %23 dim 2 : vector<4x32x128xf32>, i32 -> vector<4x32x128xf32>
    %c0_16 = arith.constant 0 : index
    %c1_17 = arith.constant 1 : index
    %c0_18 = arith.constant 0 : index
    %c0_19 = arith.constant 0 : index
    %28 = vector.load %arg4[%c0_16, %c1_17, %c0_18, %c0_19] : memref<4x2x32x128xf32, #tpu.memory_space<vmem>>, vector<4x1x32x128xf32>
    %29 = vector.shape_cast %28 : vector<4x1x32x128xf32> to vector<4x32x128xf32>
    %30 = vector.shape_cast %27 : vector<4x32x128xf32> to vector<4x1x32x128xf32>
    tpu.vector_store %arg4[%c0_16, %c1_17, %c0_18, %c0_19], %30 {strides = array<i32>} : memref<4x2x32x128xf32, #tpu.memory_space<vmem>>, vector<4x1x32x128xf32>,
    return
  }
  func.func @transform_0(%arg0: i32, %arg1: i32, %arg2: memref<16xi32, #tpu.memory_space<smem>>) -> (i32, i32, i32, i32) {
    %c0_i32 = arith.constant 0 : i32
    %c0_i32_0 = arith.constant 0 : i32
    %c0_i32_1 = arith.constant 0 : i32
    return %arg0, %arg1, %c0_i32, %c0_i32_0 : i32, i32, i32, i32
  }
  func.func @transform_1(%arg0: i32, %arg1: i32, %arg2: memref<16xi32, #tpu.memory_space<smem>>) -> (i32, i32, i32, i32) {
    %c0_i32 = arith.constant 0 : i32
    %c0_i32_0 = arith.constant 0 : i32
    %c0_i32_1 = arith.constant 0 : i32
    return %arg0, %arg1, %c0_i32, %c0_i32_0 : i32, i32, i32, i32
  }
}

</mosaic_0001>

<bundles_post_ra>
// kernel: tpu_custom_call.1
= control target key start
LH: loop header
LB: loop body
LE: loop exit
PB: predicated region body
PF: predicated region fallthrough
CT: control target
= control target key end

     0   :  { %s1424_s0 = inlined_call_operand.hbm [shape: s32[16], index: 0, kind: input, shape index: {}]   ;;  %s1425_s1 = inlined_call_operand.hbm [shape: f32[4,8,32,128], index: 1, kind: input, shape index: {}]   ;;  %s1426_s2 = inlined_call_operand.hbm [shape: f32[4,8,32,128], index: 2, kind: output, shape index: {}]  }
   0x1   :  { %s796_s11 = scalar_lea.hbm %s1424_s0, 16 }
   0x2   :  { %p797_p0 = scmp.ne.s32.totalorder %s1424_s0, %s796_s11  ;;  %p800_p1 = scmp.lt.u32.totalorder %s796_s11, %s1424_s0 }
   0x4   :  { %p802_p2 = pnand %p800_p1, %p797_p0 }
   0x6   :  { %805 = shalt.err (!%p802_p2)  }
   0x7   :  { %s864_s16 = smov [#allocation3]  }
   0x8   :  { %8 = dma.hbm_to_smem %s1424_s0, 16, %s864_s16, [#allocation2] }
   0x9   :  { %830 = dma.done.wait [#allocation2], 16 }
   0xa   :  { %831 = vsyncadd [#allocation2], 4294967280 }
   0xb   :  { %10 = sfence }
   0xc   :  { %11 = vsyncpa [#allocation5], 0 }
   0xd   :  { %13 = vsyncpa [#allocation5 + $0x1], 0 }
   0xe   :  { %14 = vsyncpa [#allocation6], 0 }
   0xf   :  { %16 = vsyncpa [#allocation6 + $0x1], 0  ;;  %s903_s19 = smov 0   ;;  %s905_s20 = smov 0  }
  0x10   :  { %s907_s21 = smov 0   ;;  %s909_s22 = smov 0  }
  0x11   :  { %s911_s23 = smov 0   ;;  %s913_s24 = smov 0  }
  0x12 LB: > { %s653_s0 = sadd.s32 4294967295, %s862_s24   ;;  %s654_s25 = sadd.s32 4294967294, %s862_s24   ;;  %s862_s24 = sphi %s913_s24, %s22_s24   ;;  %s858_s23 = sphi %s911_s23, %s1439_s23   ;;  %s854_s22 = sphi %s909_s22, %s1438_s22   ;;  %s850_s21 = sphi %s907_s21, %s1437_s21   ;;  %s846_s20 = sphi %s905_s20, %s1436_s20   ;;  %s842_s19 = sphi %s903_s19, %s1435_s19  }
  0x13   : > { %s31_s26 = sadd.s32 1, %s858_s23  ;;  %s43_s27 = sadd.s32 1, %s850_s21 }
  0x14   : > { %p32_p3 = scmp.ge.s32.totalorder %s31_s26, 4  ;;  %p50_p4 = scmp.ne.s32.totalorder %s850_s21, %s846_s20 }
  0x15   : > { %p51_p5 = scmp.eq.s32.totalorder %s862_s24, 0  ;;  %p56_p6 = scmp.ne.s32.totalorder %s846_s20, %s842_s19 }
  0x16   : > { %s1441_s26 = smov (%p32_p3, %s31_s26), 0  ;;  %p57_p8 = scmp.eq.s32.totalorder %s653_s0, 0 }
  0x17   : > { %p944_p7 = por %p51_p5, %p50_p4  ;;  %s39_s29 = ssub.s32 %s858_s23, %s1441_s26 }
  0x18   : > { %p82_p9 = scmp.eq.s32.totalorder %s653_s0, 3  ;;  %p41_p10 = scmp.eq.s32.totalorder %s39_s29, 0 }
  0x19   : > { %p950_p11 = por %p57_p8, %p56_p6  ;;  %p88_p13 = scmp.eq.s32.totalorder %s654_s25, 3 }
  0x1a   : > { %p954_p12 = por %p82_p9, %p50_p4  ;;  %p656_p1 = scmp.ge.s32.totalorder %s862_s24, 4 }
  0x1b   : > { %s959_s4 = scalar_select %p41_p10, %s850_s21, %s43_s27  }
  0x1c   : > { %p961_p0 = por %p88_p13, %p56_p6  ;;  %104 = sbr.rel (%p656_p1) target bundleno = 48 (0x30), region = 16 }
  0x23   : > { %s108_s6 = sand.u32 1, %s850_s21   ;;  %s708_s8 = sshll.u32 %s858_s23, 10 }
  0x24   : > { %s657_s7 = sshll.u32 %s108_s6, 8  ;;  %s122_s12 = scalar_lea.hbm %s1425_s1, %s708_s8 }
  0x25   : > { %s714_s9 = scalar_select %p944_p7, [#allocation0], [#allocation12] }
  0x26   : > { %s112_s14 = scalar_lea.vmem [#allocation4], %s657_s7  ;;  %s865_s16 = smov 4096  }
  0x27   : > { %s127_s13 = sld [smem:[%s714_s9]]   ;;  %s135_s15 = sshll.u32 %s112_s14, 4  ;;  %s136_s15 = int_to_ptr.vmem [resolvable:$true] %s135_s15 }
  0x28   : > { %715 = sst [smem:[#allocation9]] (%p944_p7), %s865_s16  ;;  %s866_s17 = smov 1024  }
  0x29   : > { %716 = sst [smem:[#allocation9 + $0x1]] (%p944_p7), %s866_s17  ;;  %s867_s18 = smov 8  }
  0x2a   : > { %717 = sst [smem:[#allocation9 + $0x2]] (%p944_p7), %s867_s18  ;;  %s868_s0 = smov 128  }
  0x2b   : > { %718 = sst [smem:[#allocation9 + $0x3]] (%p944_p7), %s868_s0  ;;  %s109_s29 = scalar_lea.sflag [#allocation5], %s108_s6 }
  0x2c   : > { %719 = sst [smem:[#allocation9 + $0x4]] (%p944_p7), %s868_s0  ;;  %s869_s7 = smov [#allocation8]  }
  0x2d   : > { %s661_s25 = sshll.u32 %s127_s13, 26  ;;  %720 = sst [smem:[#allocation9 + $0x5]] (%p944_p7), %s867_s18 }
  0x2e   : > { %s662_s27 = sadd.s32 134217728, %s661_s25 }
  0x2f   : > { %721 = dma.general (%p944_p7), %s122_s12, 4096, %s136_s15, %s109_s29, %s869_s7, [#allocation9], %s662_s27, 0  }
  0x30 PF: > { %p663_p2 = scmp.ge.s32.totalorder %s862_s24, 1  ;;  %p156_p3 = scmp.lt.s32.totalorder %s862_s24, 5 }
  0x32   : > { %p157_p4 = pnand %p663_p2, %p156_p3 }
  0x33   : > { %s990_s8 = sand.u32 (!%p157_p4), 1, %s846_s20  }
  0x34   : > { %160 = sbr.rel (%p157_p4) target bundleno = 261 (0x105), region = 24  ;;  %s664_s9 = sshll.u32 (!%p157_p4), %s990_s8, 8 }
  0x35   : > { %s163_s10 = scalar_lea.sflag (!%p157_p4), [#allocation5], %s990_s8  ;;  %s996_s6 = scalar_lea.vmem (!%p157_p4), [#allocation4], %s664_s9 }
  0x3b   : > { %833 = dma.done.wait (%p950_p11), %s163_s10, 4096  }
  0x3c   : > { %835 = vsyncadd (%p950_p11), %s163_s10, 4294963200  ;;  %s1003_s28 = sshll.u32 %s854_s22, 2  ;;  %v247_v0 = vlaneseq  ;;  %v194_v2 = vld [vmem:[%s996_s6] sm:$0xff]  ;;  %v195_v3 = vld [vmem:[%s996_s6 + $0x8] sm:$0xff] }
  0x3d   : > { %s191_s11 = sld [smem:[#allocation3 + %s1003_s28]]  ;;  %s192_s12 = sadd.s32 1, %s1003_s28  ;;  %v196_v4 = vld [vmem:[%s996_s6 + $0x10] sm:$0xff]  ;;  %v197_v5 = vld [vmem:[%s996_s6 + $0x18] sm:$0xff]  ;;  %v198_v7 = vld [vmem:[%s996_s6 + $0x40] sm:$0xff] }
  0x3e   : > { %s1007_s13 = sld [smem:[#allocation3 + %s192_s12]]  ;;  %v1009_v1 = vshrl.u32 %v247_v0, 7  ;;  %v199_v8 = vld [vmem:[%s996_s6 + $0x48] sm:$0xff]  ;;  %s710_s0 = sadd.s32 2, %s1003_s28  ;;  %v200_v17 = vld [vmem:[%s996_s6 + $0x50] sm:$0xff]  ;;  %v201_v24 = vld [vmem:[%s996_s6 + $0x58] sm:$0xff] }
  0x3f   : > { %s1051_s27 = sld [smem:[#allocation3 + %s710_s0]]  ;;  %v202_v28 = vld [vmem:[%s996_s6 + $0x80] sm:$0xff]  ;;  %v203_v29 = vld [vmem:[%s996_s6 + $0x88] sm:$0xff]  ;;  %v204_v34 = vld [vmem:[%s996_s6 + $0x90] sm:$0xff] }
  0x40   : > { %v205_v38 = vld [vmem:[%s996_s6 + $0x98] sm:$0xff]  ;;  %v206_v56 = vld [vmem:[%s996_s6 + $0xc0] sm:$0xff]  ;;  %v207_v58 = vld [vmem:[%s996_s6 + $0xc8] sm:$0xff] }
  0x41   : > { %v208_v59 = vld [vmem:[%s996_s6 + $0xd0] sm:$0xff]  ;;  %v209_v61 = vld [vmem:[%s996_s6 + $0xd8] sm:$0xff] }
  0x43   : > { %s210_s30 = sand.u32 31, %s191_s11  }
  0x44   : > { %s211_s14 = sand.u32 7, %s210_s30   ;;  %s212_s15 = sshrl.u32 %s210_s30, 3 }
  0x45   : > { %s213_s16 = ssub.s32 8, %s211_s14  ;;  %v246_v6 = vstv %s211_s14  ;;  %s266_s17 = sand.u32 1, %s212_s15 }
  0x46   : > { %v1017_v9 = vstv %s213_s16  ;;  %vm1020_vm0 = vcmp.lt.s32.totalorder %v1009_v1, %v246_v6  ;;  %v1024_v11 = vstv %s266_s17  ;;  %s285_s18 = sand.u32 2, %s212_s15  ;;  %s1046_s25 = sand.u32 127, %s1007_s13  }
  0x47   : > { %v215_v12 = vrot.slane %v194_v2, %v1017_v9  ;;  %v223_v13 = vrot.slane %v195_v3, %v1017_v9  ;;  %v231_v14 = vrot.slane %v196_v4, %v1017_v9  ;;  %v239_v15 = vrot.slane %v197_v5, %v1017_v9  ;;  %s376_s29 = sand.u32 31, %s1051_s27   ;;  %s357_s13 = sadd.s32 1, %s710_s0 }
  0x48   : > { %vm268_vm1 = vcmp.ne.s32.totalorder %v1024_v11, 0  ;;  %v1032_v16 = vstv %s285_s18  ;;  %v217_v18 = vrot.slane %v198_v7, %v1017_v9  ;;  %v225_v19 = vrot.slane %v199_v8, %v1017_v9  ;;  %s1121_s7 = sand.u32 7, %s376_s29   ;;  %s1144_s11 = sshrl.u32 %s376_s29, 3 }
  0x49   : > { %v250_v20 = vsel %vm1020_vm0, %v231_v14, %v239_v15  ;;  %v254_v21 = vsel %vm1020_vm0, %v223_v13, %v231_v14  ;;  %v258_v22 = vsel %vm1020_vm0, %v215_v12, %v223_v13  ;;  %v262_v23 = vsel %vm1020_vm0, %v239_v15, %v215_v12  ;;  %s379_s10 = ssub.s32 8, %s1121_s7  ;;  %v669_v14 = vld [vmem:[%s996_s6 + $0x20] sm:$0xff]  ;;  %v670_v15 = vld [vmem:[%s996_s6 + $0x28] sm:$0xff]  ;;  %s430_s12 = sand.u32 1, %s1144_s11 }
  0x4a   : > { %v269_v25 = vsel %vm268_vm1, %v250_v20, %v262_v23  ;;  %v271_v26 = vsel %vm268_vm1, %v258_v22, %v254_v21  ;;  %vm287_vm2 = vcmp.ne.s32.totalorder %v1032_v16, 0  ;;  %v270_v27 = vsel %vm268_vm1, %v262_v23, %v258_v22  ;;  %v671_v22 = vld [vmem:[%s996_s6 + $0x30] sm:$0xff]  ;;  %s449_s28 = sand.u32 2, %s1144_s11  ;;  %s358_s30 = sld [smem:[#allocation3 + %s357_s13]] }
  0x4b   : > { %v290_v30 = vsel %vm287_vm2, %v269_v25, %v271_v26  ;;  %v288_v31 = vsel %vm287_vm2, %v271_v26, %v269_v25  ;;  %v272_v32 = vsel %vm268_vm1, %v254_v21, %v250_v20  ;;  %v233_v33 = vrot.slane %v200_v17, %v1017_v9  ;;  %v672_v20 = vld [vmem:[%s996_s6 + $0x38] sm:$0xff] }
  0x4c   : > { %310 = vrot.lane.b32.xlu1 %v290_v30, %s1046_s25  ;;  %306 = vrot.lane.b32.xlu0 %v288_v31, %s1046_s25  ;;  %v291_v35 = vsel %vm287_vm2, %v270_v27, %v272_v32  ;;  %v289_v36 = vsel %vm287_vm2, %v272_v32, %v270_v27  ;;  %v241_v37 = vrot.slane %v201_v24, %v1017_v9  ;;  %v1152_v17 = vstv %s379_s10 }
  0x4d   : > { %v255_v39 = vsel %vm1020_vm0, %v225_v19, %v233_v33  ;;  %v259_v40 = vsel %vm1020_vm0, %v217_v18, %v225_v19  ;;  %v219_v41 = vrot.slane %v202_v28, %v1017_v9  ;;  %v227_v42 = vrot.slane %v203_v29, %v1017_v9 }
  0x4e   : > { %v251_v43 = vsel %vm1020_vm0, %v233_v33, %v241_v37  ;;  %v263_v44 = vsel %vm1020_vm0, %v241_v37, %v217_v18  ;;  %v275_v45 = vsel %vm268_vm1, %v259_v40, %v255_v39  ;;  %v235_v46 = vrot.slane %v204_v34, %v1017_v9 }
  0x4f   : > { %v274_v47 = vsel %vm268_vm1, %v263_v44, %v259_v40  ;;  %v276_v48 = vsel %vm268_vm1, %v255_v39, %v251_v43  ;;  %v273_v49 = vsel %vm268_vm1, %v251_v43, %v263_v44  ;;  %v243_v50 = vrot.slane %v205_v38, %v1017_v9  ;;  %v673_v39 = vld [vmem:[%s996_s6 + $0x60] sm:$0xff]  ;;  %v674_v40 = vld [vmem:[%s996_s6 + $0x68] sm:$0xff] }
  0x50   : > { %312 = vrot.lane.b32.xlu1 %v291_v35, %s1046_s25  ;;  %308 = vrot.lane.b32.xlu0 %v289_v36, %s1046_s25  ;;  %v293_v51 = vsel %vm287_vm2, %v276_v48, %v274_v47  ;;  %v292_v52 = vsel %vm287_vm2, %v275_v45, %v273_v49  ;;  %v256_v54 = vsel %vm1020_vm0, %v227_v42, %v235_v46  ;;  %v412_v23 = vstv %s1121_s7  ;;  %s1234_s14 = sand.u32 127, %s358_s30  }
  0x51   : > { %v252_v53 = vsel %vm1020_vm0, %v235_v46, %v243_v50  ;;  %v260_v55 = vsel %vm1020_vm0, %v219_v41, %v227_v42  ;;  %v264_v57 = vsel %vm1020_vm0, %v243_v50, %v219_v41  ;;  %v295_v60 = vsel %vm287_vm2, %v274_v47, %v276_v48  ;;  %v675_v41 = vld [vmem:[%s996_s6 + $0x70] sm:$0xff]  ;;  %v676_v42 = vld [vmem:[%s996_s6 + $0x78] sm:$0xff] }
  0x52   : > { %v294_v62 = vsel %vm287_vm2, %v273_v49, %v275_v45  ;;  %v280_v63 = vsel %vm268_vm1, %v256_v54, %v252_v53  ;;  %v279_v0 = vsel %vm268_vm1, %v260_v55, %v256_v54  ;;  %v221_v2 = vrot.slane %v206_v56, %v1017_v9 }
  0x53   : > { %v278_v3 = vsel %vm268_vm1, %v264_v57, %v260_v55  ;;  %v277_v4 = vsel %vm268_vm1, %v252_v53, %v264_v57  ;;  %v229_v5 = vrot.slane %v207_v58, %v1017_v9  ;;  %v237_v6 = vrot.slane %v208_v59, %v1017_v9  ;;  %v677_v58 = vld [vmem:[%s996_s6 + $0xa0] sm:$0xff]  ;;  %v678_v59 = vld [vmem:[%s996_s6 + $0xa8] sm:$0xff] }
  0x54   : > { %316 = vrot.lane.b32.xlu1 %v293_v51, %s1046_s25  ;;  %314 = vrot.lane.b32.xlu0 %v292_v52, %s1046_s25  ;;  %v245_v7 = vrot.slane %v209_v61, %v1017_v9  ;;  %v297_v8 = vsel %vm287_vm2, %v280_v63, %v278_v3  ;;  %v296_v12 = vsel %vm287_vm2, %v279_v0, %v277_v4  ;;  %v1187_v33 = vstv %s430_s12  ;;  %v680_v61 = vld [vmem:[%s996_s6 + $0xb8] sm:$0xff] }
  0x55   : > { %v257_v13 = vsel %vm1020_vm0, %v229_v5, %v237_v6  ;;  %v261_v9 = vsel %vm1020_vm0, %v221_v2, %v229_v5  ;;  %v299_v21 = vsel %vm287_vm2, %v278_v3, %v280_v63  ;;  %v298_v24 = vsel %vm287_vm2, %v277_v4, %v279_v0 }
  0x56   : > { %v253_v18 = vsel %vm1020_vm0, %v237_v6, %v245_v7  ;;  %v265_v19 = vsel %vm1020_vm0, %v245_v7, %v221_v2  ;;  %v283_v10 = vsel %vm268_vm1, %v261_v9, %v257_v13  ;;  %v381_v25 = vrot.slane %v669_v14, %v1152_v17 }
  0x57   : > { %v389_v26 = vrot.slane %v670_v15, %v1152_v17  ;;  %v282_v27 = vsel %vm268_vm1, %v265_v19, %v261_v9  ;;  %v284_v28 = vsel %vm268_vm1, %v257_v13, %v253_v18  ;;  %v281_v29 = vsel %vm268_vm1, %v253_v18, %v265_v19  ;;  %v681_v19 = vld [vmem:[%s996_s6 + $0xe0] sm:$0xff] }
  0x58   : > { %320 = vrot.lane.b32.xlu1 %v295_v60, %s1046_s25  ;;  %318 = vrot.lane.b32.xlu0 %v294_v62, %s1046_s25  ;;  %v405_v30 = vrot.slane %v672_v20, %v1152_v17  ;;  %v397_v31 = vrot.slane %v671_v22, %v1152_v17  ;;  %vm1183_vm3 = vcmp.lt.s32.totalorder %v1009_v1, %v412_v23  ;;  %vm432_vm4 = vcmp.ne.s32.totalorder %v1187_v33, 0  ;;  %v679_v60 = vld [vmem:[%s996_s6 + $0xb0] sm:$0xff]  ;;  %v682_v20 = vld [vmem:[%s996_s6 + $0xe8] sm:$0xff] }
  0x59   : > { %v301_v11 = vsel %vm287_vm2, %v284_v28, %v282_v27  ;;  %v300_v34 = vsel %vm287_vm2, %v283_v10, %v281_v29  ;;  %v422_v1 = vsel %vm1183_vm3, %v381_v25, %v389_v26  ;;  %v1205_v38 = vstv %s449_s28  ;;  %v684_v22 = vld [vmem:[%s996_s6 + $0xf8] sm:$0xff] }
  0x5a   : > { %v426_v35 = vsel %vm1183_vm3, %v405_v30, %v381_v25  ;;  %v414_v36 = vsel %vm1183_vm3, %v397_v31, %v405_v30  ;;  %v418_v37 = vsel %vm1183_vm3, %v389_v26, %v397_v31  ;;  %v303_v43 = vsel %vm287_vm2, %v282_v27, %v284_v28 }
  0x5b   : > { %v302_v44 = vsel %vm287_vm2, %v281_v29, %v283_v10  ;;  %v434_v45 = vsel %vm432_vm4, %v426_v35, %v422_v1  ;;  %v436_v46 = vsel %vm432_vm4, %v418_v37, %v414_v36  ;;  %vm451_vm5 = vcmp.ne.s32.totalorder %v1205_v38, 0 }
  0x5c   : > { %324 = vrot.lane.b32.xlu1 %v297_v8, %s1046_s25  ;;  %322 = vrot.lane.b32.xlu0 %v296_v12, %s1046_s25  ;;  %v433_v47 = vsel %vm432_vm4, %v414_v36, %v426_v35  ;;  %v435_v48 = vsel %vm432_vm4, %v422_v1, %v418_v37  ;;  %v383_v49 = vrot.slane %v673_v39, %v1152_v17 }
  0x5d   : > { %v391_v16 = vrot.slane %v674_v40, %v1152_v17  ;;  %v399_v50 = vrot.slane %v675_v41, %v1152_v17  ;;  %v407_v51 = vrot.slane %v676_v42, %v1152_v17  ;;  %v453_v52 = vsel %vm451_vm5, %v436_v46, %v434_v45 }
  0x5e   : > { %v452_v53 = vsel %vm451_vm5, %v435_v48, %v433_v47  ;;  %v455_v62 = vsel %vm451_vm5, %v434_v45, %v436_v46  ;;  %v454_v63 = vsel %vm451_vm5, %v433_v47, %v435_v48  ;;  %v385_v5 = vrot.slane %v677_v58, %v1152_v17 }
  0x5f   : > { %v415_v54 = vsel %vm1183_vm3, %v399_v50, %v407_v51  ;;  %v419_v55 = vsel %vm1183_vm3, %v391_v16, %v399_v50  ;;  %v423_v56 = vsel %vm1183_vm3, %v383_v49, %v391_v16  ;;  %v427_v57 = vsel %vm1183_vm3, %v407_v51, %v383_v49 }
  0x60   : > { %328 = vrot.lane.b32.xlu1 %v299_v21, %s1046_s25  ;;  %326 = vrot.lane.b32.xlu0 %v298_v24, %s1046_s25  ;;  %v438_v0 = vsel %vm432_vm4, %v427_v57, %v423_v56  ;;  %v440_v2 = vsel %vm432_vm4, %v419_v55, %v415_v54  ;;  %v437_v3 = vsel %vm432_vm4, %v415_v54, %v427_v57  ;;  %v683_v21 = vld [vmem:[%s996_s6 + $0xf0] sm:$0xff]  ;;  %s1348_s6 = scalar_lea.vmem [#allocation7], %s664_s9  ;;  %s520_s9 = scalar_lea.sflag [#allocation6], %s990_s8 }
  0x61   : > { %v439_v4 = vsel %vm432_vm4, %v423_v56, %v419_v55  ;;  %v393_v6 = vrot.slane %v678_v59, %v1152_v17  ;;  %v401_v7 = vrot.slane %v679_v60, %v1152_v17  ;;  %v409_v8 = vrot.slane %v680_v61, %v1152_v17 }
  0x62   : > { %v457_v12 = vsel %vm451_vm5, %v440_v2, %v438_v0  ;;  %v456_v13 = vsel %vm451_vm5, %v439_v4, %v437_v3  ;;  %v459_v23 = vsel %vm451_vm5, %v438_v0, %v440_v2  ;;  %v458_v24 = vsel %vm451_vm5, %v437_v3, %v439_v4 }
  0x63   : > { %v416_v9 = vsel %vm1183_vm3, %v401_v7, %v409_v8  ;;  %v420_v14 = vsel %vm1183_vm3, %v393_v6, %v401_v7  ;;  %v424_v15 = vsel %vm1183_vm3, %v385_v5, %v393_v6  ;;  %v428_v18 = vsel %vm1183_vm3, %v409_v8, %v385_v5 }
  0x64   : > { %332 = vrot.lane.b32.xlu1 %v301_v11, %s1046_s25  ;;  %330 = vrot.lane.b32.xlu0 %v300_v34, %s1046_s25  ;;  %v442_v10 = vsel %vm432_vm4, %v428_v18, %v424_v15  ;;  %v444_v25 = vsel %vm432_vm4, %v420_v14, %v416_v9  ;;  %v441_v26 = vsel %vm432_vm4, %v416_v9, %v428_v18 }
  0x65   : > { %v443_v27 = vsel %vm432_vm4, %v424_v15, %v420_v14  ;;  %v387_v28 = vrot.slane %v681_v19, %v1152_v17  ;;  %v395_v29 = vrot.slane %v682_v20, %v1152_v17  ;;  %v403_v30 = vrot.slane %v683_v21, %v1152_v17 }
  0x66   : > { %v411_v31 = vrot.slane %v684_v22, %v1152_v17  ;;  %v461_v11 = vsel %vm451_vm5, %v444_v25, %v442_v10  ;;  %v460_v34 = vsel %vm451_vm5, %v443_v27, %v441_v26  ;;  %v463_v37 = vsel %vm451_vm5, %v442_v10, %v444_v25 }
  0x67   : > { %v421_v35 = vsel %vm1183_vm3, %v395_v29, %v403_v30  ;;  %v425_v17 = vsel %vm1183_vm3, %v387_v28, %v395_v29  ;;  %v462_v39 = vsel %vm451_vm5, %v441_v26, %v443_v27 }
  0x68   : > { %336 = vrot.lane.b32.xlu1 %v303_v43, %s1046_s25  ;;  %334 = vrot.lane.b32.xlu0 %v302_v44, %s1046_s25  ;;  %v417_v1 = vsel %vm1183_vm3, %v403_v30, %v411_v31  ;;  %v429_v36 = vsel %vm1183_vm3, %v411_v31, %v387_v28  ;;  %v447_v42 = vsel %vm432_vm4, %v425_v17, %v421_v35 }
  0x69   : > { %v446_v40 = vsel %vm432_vm4, %v429_v36, %v425_v17  ;;  %v448_v41 = vsel %vm432_vm4, %v421_v35, %v417_v1  ;;  %v445_v32 = vsel %vm432_vm4, %v417_v1, %v429_v36 }
  0x6a   : > { %v465_v43 = vsel %vm451_vm5, %v448_v41, %v446_v40  ;;  %v464_v44 = vsel %vm451_vm5, %v447_v42, %v445_v32  ;;  %v467_v45 = vsel %vm451_vm5, %v446_v40, %v448_v41  ;;  %v466_v46 = vsel %vm451_vm5, %v445_v32, %v447_v42 }
  0x6c   : > { %472 = vrot.lane.b32.xlu1 %v453_v52, %s1234_s14  ;;  %470 = vrot.lane.b32.xlu0 %v452_v53, %s1234_s14 }
  0x70   : > { %476 = vrot.lane.b32.xlu1 %v455_v62, %s1234_s14  ;;  %474 = vrot.lane.b32.xlu0 %v454_v63, %s1234_s14 }
  0x74   : > { %480 = vrot.lane.b32.xlu1 %v457_v12, %s1234_s14  ;;  %478 = vrot.lane.b32.xlu0 %v456_v13, %s1234_s14 }
  0x78   : > { %484 = vrot.lane.b32.xlu1 %v459_v23, %s1234_s14  ;;  %482 = vrot.lane.b32.xlu0 %v458_v24, %s1234_s14 }
  0x7c   : > { %488 = vrot.lane.b32.xlu1 %v461_v11, %s1234_s14  ;;  %486 = vrot.lane.b32.xlu0 %v460_v34, %s1234_s14 }
  0x80   : > { %492 = vrot.lane.b32.xlu1 %v463_v37, %s1234_s14  ;;  %490 = vrot.lane.b32.xlu0 %v462_v39, %s1234_s14 }
  0x84   : > { %496 = vrot.lane.b32.xlu1 %v465_v43, %s1234_s14  ;;  %494 = vrot.lane.b32.xlu0 %v464_v44, %s1234_s14 }
  0x88   : > { %500 = vrot.lane.b32.xlu1 %v467_v45, %s1234_s14  ;;  %498 = vrot.lane.b32.xlu0 %v466_v46, %s1234_s14 }
  0xbe   : > { %v311_v33 = vpop.permute.xlu1 %310  ;;  %v307_v47 = vpop.permute.xlu0 %306 }
  0xbf   : > { %340 = vst [vmem:[%s1348_s6 + $0x10] sm:$0xff] %v311_v33  ;;  %338 = vst [vmem:[%s1348_s6] sm:$0xff] %v307_v47 }
  0xc2   : > { %v313_v38 = vpop.permute.xlu1 %312  ;;  %v309_v48 = vpop.permute.xlu0 %308 }
  0xc3   : > { %341 = vst [vmem:[%s1348_s6 + $0x18] sm:$0xff] %v313_v38  ;;  %339 = vst [vmem:[%s1348_s6 + $0x8] sm:$0xff] %v309_v48 }
  0xc6   : > { %v317_v49 = vpop.permute.xlu1 %316  ;;  %v315_v16 = vpop.permute.xlu0 %314 }
  0xc7   : > { %343 = vst [vmem:[%s1348_s6 + $0x48] sm:$0xff] %v317_v49  ;;  %342 = vst [vmem:[%s1348_s6 + $0x40] sm:$0xff] %v315_v16 }
  0xca   : > { %v321_v50 = vpop.permute.xlu1 %320  ;;  %v319_v51 = vpop.permute.xlu0 %318 }
  0xcb   : > { %345 = vst [vmem:[%s1348_s6 + $0x58] sm:$0xff] %v321_v50  ;;  %344 = vst [vmem:[%s1348_s6 + $0x50] sm:$0xff] %v319_v51 }
  0xce   : > { %v325_v52 = vpop.permute.xlu1 %324  ;;  %v323_v53 = vpop.permute.xlu0 %322 }
  0xcf   : > { %347 = vst [vmem:[%s1348_s6 + $0x88] sm:$0xff] %v325_v52  ;;  %346 = vst [vmem:[%s1348_s6 + $0x80] sm:$0xff] %v323_v53 }
  0xd2   : > { %v329_v54 = vpop.permute.xlu1 %328  ;;  %v327_v55 = vpop.permute.xlu0 %326 }
  0xd3   : > { %349 = vst [vmem:[%s1348_s6 + $0x98] sm:$0xff] %v329_v54  ;;  %348 = vst [vmem:[%s1348_s6 + $0x90] sm:$0xff] %v327_v55 }
  0xd6   : > { %v333_v56 = vpop.permute.xlu1 %332  ;;  %v331_v57 = vpop.permute.xlu0 %330 }
  0xd7   : > { %351 = vst [vmem:[%s1348_s6 + $0xc8] sm:$0xff] %v333_v56  ;;  %350 = vst [vmem:[%s1348_s6 + $0xc0] sm:$0xff] %v331_v57 }
  0xda   : > { %v337_v58 = vpop.permute.xlu1 %336  ;;  %v335_v59 = vpop.permute.xlu0 %334 }
  0xdb   : > { %353 = vst [vmem:[%s1348_s6 + $0xd8] sm:$0xff] %v337_v58  ;;  %352 = vst [vmem:[%s1348_s6 + $0xd0] sm:$0xff] %v335_v59 }
  0xde   : > { %v473_v60 = vpop.permute.xlu1 %472  ;;  %v471_v61 = vpop.permute.xlu0 %470 }
  0xdf   : > { %686 = vst [vmem:[%s1348_s6 + $0x28] sm:$0xff] %v473_v60  ;;  %685 = vst [vmem:[%s1348_s6 + $0x20] sm:$0xff] %v471_v61 }
  0xe2   : > { %v477_v62 = vpop.permute.xlu1 %476  ;;  %v475_v63 = vpop.permute.xlu0 %474 }
  0xe3   : > { %688 = vst [vmem:[%s1348_s6 + $0x38] sm:$0xff] %v477_v62  ;;  %687 = vst [vmem:[%s1348_s6 + $0x30] sm:$0xff] %v475_v63 }
  0xe6   : > { %v481_v0 = vpop.permute.xlu1 %480  ;;  %v479_v2 = vpop.permute.xlu0 %478 }
  0xe7   : > { %690 = vst [vmem:[%s1348_s6 + $0x68] sm:$0xff] %v481_v0  ;;  %689 = vst [vmem:[%s1348_s6 + $0x60] sm:$0xff] %v479_v2 }
  0xea   : > { %v485_v3 = vpop.permute.xlu1 %484  ;;  %v483_v4 = vpop.permute.xlu0 %482 }
  0xeb   : > { %692 = vst [vmem:[%s1348_s6 + $0x78] sm:$0xff] %v485_v3  ;;  %691 = vst [vmem:[%s1348_s6 + $0x70] sm:$0xff] %v483_v4 }
  0xee   : > { %v489_v5 = vpop.permute.xlu1 %488  ;;  %v487_v6 = vpop.permute.xlu0 %486 }
  0xef   : > { %694 = vst [vmem:[%s1348_s6 + $0xa8] sm:$0xff] %v489_v5  ;;  %693 = vst [vmem:[%s1348_s6 + $0xa0] sm:$0xff] %v487_v6 }
  0xf2   : > { %v493_v7 = vpop.permute.xlu1 %492  ;;  %v491_v8 = vpop.permute.xlu0 %490 }
  0xf3   : > { %696 = vst [vmem:[%s1348_s6 + $0xb8] sm:$0xff] %v493_v7  ;;  %695 = vst [vmem:[%s1348_s6 + $0xb0] sm:$0xff] %v491_v8 }
  0xf6   : > { %v497_v12 = vpop.permute.xlu1 %496  ;;  %v495_v13 = vpop.permute.xlu0 %494 }
  0xf7   : > { %698 = vst [vmem:[%s1348_s6 + $0xe8] sm:$0xff] %v497_v12  ;;  %697 = vst [vmem:[%s1348_s6 + $0xe0] sm:$0xff] %v495_v13 }
  0xfa   : > { %v501_v9 = vpop.permute.xlu1 %500  ;;  %v499_v14 = vpop.permute.xlu0 %498 }
  0xfb   : > { %700 = vst [vmem:[%s1348_s6 + $0xf8] sm:$0xff] %v501_v9  ;;  %699 = vst [vmem:[%s1348_s6 + $0xf0] sm:$0xff] %v499_v14 }
  0xfc   : > { %s712_s15 = sshll.u32 %s854_s22, 10  ;;  %s553_s16 = sshll.u32 %s1348_s6, 4  ;;  %s554_s16 = int_to_ptr.vmem [resolvable:$true] %s553_s16 }
  0xfd   : > { %s536_s0 = scalar_lea.hbm %s1426_s2, %s712_s15  ;;  %s870_s25 = smov 1024  }
  0xfe   : > { %723 = sst [smem:[#allocation11]] (%p954_p12), %s870_s25  ;;  %s871_s8 = smov 4096  }
  0xff   : > { %724 = sst [smem:[#allocation11 + $0x1]] (%p954_p12), %s871_s8  ;;  %s872_s27 = smov 8  }
 0x100   : > { %725 = sst [smem:[#allocation11 + $0x2]] (%p954_p12), %s872_s27  ;;  %s873_s29 = smov 128  }
 0x101   : > { %726 = sst [smem:[#allocation11 + $0x3]] (%p954_p12), %s873_s29  ;;  %s874_s22 = smov [#allocation10]  }
 0x102   : > { %727 = sst [smem:[#allocation11 + $0x4]] (%p954_p12), %s873_s29  ;;  %s875_s7 = smov 0  }
 0x103   : > { %728 = sst [smem:[#allocation11 + $0x5]] (%p954_p12), %s872_s27 }
 0x104   : > { %729 = dma.general (%p954_p12), %s554_s16, 4096, %s536_s0, %s520_s9, %s874_s22, [#allocation11], %s875_s7, 0  }
 0x105 PF: > { %p735_p5 = scmp.ge.s32.totalorder %s862_s24, 2  ;;  %s581_s10 = sand.u32 1, %s842_s19  }
 0x106   : > { %s582_s11 = scalar_lea.sflag [#allocation6], %s581_s10 }
 0x107   : > { %p732_p6 = pnand %p735_p5, %p961_p0 }
 0x109   : > { %837 = dma.done.wait (!%p732_p6), %s582_s11, 4096  }
 0x10a   : > { %839 = vsyncadd (!%p732_p6), %s582_s11, 4294963200  ;;  %s22_s24 = sadd.s32 1, %s862_s24   ;;  %s1435_s19 = smov %s846_s20 }
 0x10b   : > { %p19_p7 = scmp.ge.s32.totalorder %s22_s24, 6   ;;  %s1436_s20 = smov %s850_s21 }
 0x10c   : > { %s1437_s21 = smov %s959_s4  ;;  %s1438_s22 = smov %s858_s23 }
 0x10d   : > { %s1439_s23 = smov %s1441_s26  ;;  %21 = sbr.rel (!%p19_p7) target bundleno = 18 (0x12), region = 81 }
 0x114   :  { %587 = vsyncpa [#allocation5], 1 }
 0x115   :  { %589 = vsyncpa [#allocation5 + $0x1], 1 }
 0x116   :  { %590 = vsyncpa [#allocation6], 1 }
 0x117   :  { %592 = vsyncpa [#allocation6 + $0x1], 1 }

</bundles_post_ra>
